<compile_context>
chip_gen: v5e
topology: v5e:2x2
jax: 0.10.0
libtpu: 0.0.40
codegen_flags: <defaults>
</compile_context>

<pallas_src>
import functools

import jax
import jax.numpy as jnp
from jax.experimental import pallas as pl
from jax.experimental.pallas import tpu as pltpu


def _proj_kernel(h_ref, w_ref, a12_ref, wh_ref, e1_ref, e2_ref):
    # Wh = h @ W ; logits = Wh @ [a1 | a2]
    wh = jnp.dot(h_ref[...], w_ref[...], preferred_element_type=jnp.float32)   # [N, F_out]
    logits = jnp.dot(wh, a12_ref[...], preferred_element_type=jnp.float32)     # [N, 2]
    wh_ref[...] = wh
    e1_ref[...] = logits[:, 0:1]        # [N, 1]  row logit (sublane-major)
    e2_ref[...] = logits[:, 1:2].T      # [1, N]  col logit (lane-major, transposed ONCE)


def _attn_kernel(adj_ref, wh_ref, e1_ref, e2_ref, out_ref, *, alpha):
    # adj_ref: [T, N] int8 (streamed)   wh_ref: [N, F] f32 (resident)
    # e1_ref : [T, 1] f32               e2_ref: [1, N] f32 (resident)
    e = e1_ref[...] + e2_ref[...]                       # [T, N] lane-aligned broadcast add
    e = jnp.maximum(e, alpha * e)                       # LeakyReLU (alpha in (0,1))
    att = jnp.where(adj_ref[...] > 0, e, jnp.float32(-9e15))   # mask fused in one select
    att = att - jnp.max(att, axis=1, keepdims=True)
    p = jnp.exp(att)
    inv = pl.reciprocal(jnp.sum(p, axis=1, keepdims=True), approx=True)   # EUP slot
    att = p * inv
    h_prime = jnp.dot(att, wh_ref[...], preferred_element_type=jnp.float32)  # [T, F]
    # ELU (concat=True branch)
    out_ref[...] = jnp.where(h_prime > 0, h_prime, jnp.exp(h_prime) - 1.0)


def _pick_tile_n(n):
    # Double-buffered int8 adj stream = 2 * tile * n bytes; keep it well under
    # the scoped-VMEM defaults of every generation (16 MiB v5e / 32 MiB v6e,v7x,
    # 64 MiB physical on v7x), while preferring the biggest tile (<= 512 rows).
    budget = 6 << 20
    t = min(budget // (2 * max(n, 1)), 512, n)
    t = (t // 32) * 32                      # int8 native sublane tiling is (32, 128)
    return max(t, min(n, 32))


def gat_layer(h, adj, W, a, *, alpha=0.2, tile_n=None):
    """Single-head GAT layer forward (concat=True, dropout skipped)."""
    N, f_in = h.shape
    f_out = W.shape[1]

    # {0,1} adjacency as int8: the N^2 stream dominates HBM traffic, so shrink
    # it 4x. (A real model would cache this mask once per graph.)
    adj_mask = (adj > 0).astype(jnp.int8)

    # [F_out, 2] = [a1 | a2] so both logit projections run as one matmul.
    a12 = jnp.concatenate([a[:f_out, :], a[f_out:, :]], axis=1)

    # ---- kernel 1: projection + attention logit vectors (cheap, runs once) ----
    wh, e1, e2 = pl.pallas_call(
        _proj_kernel,
        out_shape=(
            jax.ShapeDtypeStruct((N, f_out), jnp.float32),
            jax.ShapeDtypeStruct((N, 1), jnp.float32),
            jax.ShapeDtypeStruct((1, N), jnp.float32),
        ),
        grid_spec=pltpu.PrefetchScalarGridSpec(
            num_scalar_prefetch=0,
            grid=(1,),
            in_specs=[
                pl.BlockSpec((N, f_in), lambda i: (0, 0)),
                pl.BlockSpec((f_in, f_out), lambda i: (0, 0)),
                pl.BlockSpec((f_out, 2), lambda i: (0, 0)),
            ],
            out_specs=(
                pl.BlockSpec((N, f_out), lambda i: (0, 0)),
                pl.BlockSpec((N, 1), lambda i: (0, 0)),
                pl.BlockSpec((1, N), lambda i: (0, 0)),
            ),
        ),
        compiler_params=pltpu.CompilerParams(
            dimension_semantics=("arbitrary",)),
    )(h, W, a12)

    # ---- kernel 2: row-tiled masked softmax + aggregation (the N^2 work) ----
    if tile_n is None:
        tile_n = _pick_tile_n(N)
    grid = (pl.cdiv(N, tile_n),)

    kernel = functools.partial(_attn_kernel, alpha=float(alpha))
    out = pl.pallas_call(
        kernel,
        out_shape=jax.ShapeDtypeStruct((N, f_out), jnp.float32),
        grid_spec=pltpu.PrefetchScalarGridSpec(
            num_scalar_prefetch=0,
            grid=grid,
            in_specs=[
                pl.BlockSpec((tile_n, N), lambda i: (i, 0)),   # adj tile (streamed, int8)
                pl.BlockSpec((N, f_out), lambda i: (0, 0)),    # Wh (resident)
                pl.BlockSpec((tile_n, 1), lambda i: (i, 0)),   # e1 tile
                pl.BlockSpec((1, N), lambda i: (0, 0)),        # e2 row (resident)
            ],
            out_specs=pl.BlockSpec((tile_n, f_out), lambda i: (i, 0)),
        ),
        compiler_params=pltpu.CompilerParams(
            dimension_semantics=("parallel",)),   # rows independent -> megacore on v7x
    )(adj_mask, wh, e1, e2)
    return out


def _xavier_uniform(key, shape, gain):
    fan_in, fan_out = shape[0], shape[1]
    bound = gain * jnp.sqrt(6.0 / (fan_in + fan_out))
    return jax.random.uniform(key, shape, jnp.float32, -bound, bound)


if __name__ == "__main__":
    # Small shapes consistent with the module: N nodes, in_features -> out_features.
    N, in_features, out_features = 512, 32, 32
    alpha = 0.2

    key = jax.random.PRNGKey(0)
    k_h, k_adj, k_w, k_a = jax.random.split(key, 4)

    # Deterministic parameter init (xavier_uniform, gain=1.414), as in __init__.
    W = _xavier_uniform(k_w, (in_features, out_features), gain=1.414)
    a = _xavier_uniform(k_a, (2 * out_features, 1), gain=1.414)

    # Inputs: node features + a random {0,1} adjacency with self-loops.
    h = jax.random.normal(k_h, (N, in_features), dtype=jnp.float32)
    adj = (jax.random.uniform(k_adj, (N, N)) > 0.7).astype(jnp.float32)
    adj = jnp.maximum(adj, jnp.eye(N, dtype=jnp.float32))  # self-loops

    # tile_n=128 -> grid of 4 row tiles (exercises the pipelined/parallel path).
    out = gat_layer(h, adj, W, a, alpha=alpha, tile_n=128)
    jax.block_until_ready(out)

    # Pure-JAX reference for sanity (matches the PyTorch forward, eval mode).
    Wh = h @ W
    e = Wh @ a[:out_features] + (Wh @ a[out_features:]).T
    e = jnp.where(e > 0, e, alpha * e)
    att = jnp.where(adj > 0, e, -9e15)
    att = jax.nn.softmax(att, axis=1)
    ref = jax.nn.elu(att @ Wh)

    # Tolerance slightly relaxed vs exact f32 because of the EUP approximate
    # reciprocal in the softmax normalization.
    assert jnp.allclose(out, ref, atol=5e-3, rtol=5e-3), "mismatch vs reference"

    print("KERNEL_OK")
</pallas_src>

<mosaic_0001>
module attributes {stable_mosaic.version = 11 : i64} {
  func.func @_proj_kernel(%arg0: i32, %arg1: memref<512x32xf32, #tpu.memory_space<vmem>>, %arg2: memref<32x32xf32, #tpu.memory_space<vmem>>, %arg3: memref<32x2xf32, #tpu.memory_space<vmem>>, %arg4: memref<512x32xf32, #tpu.memory_space<vmem>>, %arg5: memref<512x1xf32, #tpu.memory_space<vmem>>, %arg6: memref<1x512xf32, #tpu.memory_space<vmem>>) attributes {dimension_semantics = [#tpu.dimension_semantics<arbitrary>], iteration_bounds = array<i64: 1>, scalar_prefetch = 0 : i64, scratch_operands = 0 : i64, tpu.core_type = #tpu.core_type<tc>, window_params = [{pipeline_mode = #tpu.pipeline_mode<synchronous>, transform_indices = @transform_0, window_bounds = array<i64: 512, 32>}, {pipeline_mode = #tpu.pipeline_mode<synchronous>, transform_indices = @transform_1, window_bounds = array<i64: 32, 32>}, {pipeline_mode = #tpu.pipeline_mode<synchronous>, transform_indices = @transform_2, window_bounds = array<i64: 32, 2>}, {pipeline_mode = #tpu.pipeline_mode<synchronous>, transform_indices = @transform_3, window_bounds = array<i64: 512, 32>}, {pipeline_mode = #tpu.pipeline_mode<synchronous>, transform_indices = @transform_4, window_bounds = array<i64: 512, 1>}, {pipeline_mode = #tpu.pipeline_mode<synchronous>, transform_indices = @transform_5, window_bounds = array<i64: 1, 512>}]} {
    %c0 = arith.constant 0 : index
    %c0_0 = arith.constant 0 : index
    %0 = vector.load %arg1[%c0, %c0_0] : memref<512x32xf32, #tpu.memory_space<vmem>>, vector<512x32xf32>
    %c0_1 = arith.constant 0 : index
    %c0_2 = arith.constant 0 : index
    %1 = vector.load %arg2[%c0_1, %c0_2] : memref<32x32xf32, #tpu.memory_space<vmem>>, vector<32x32xf32>
    %cst = arith.constant dense<0.000000e+00> : vector<512x32xf32>
    %2 = tpu.matmul %0, %1, %cst {dimension_numbers = #tpu.dot_dimension_numbers<[1], [0], [0], [1], [0, 0, 1, 1], [], []>} : vector<512x32xf32>, vector<32x32xf32>, vector<512x32xf32> -> vector<512x32xf32>
    %c0_3 = arith.constant 0 : index
    %c0_4 = arith.constant 0 : index
    %3 = vector.load %arg3[%c0_3, %c0_4] : memref<32x2xf32, #tpu.memory_space<vmem>>, vector<32x2xf32>
    %cst_5 = arith.constant dense<0.000000e+00> : vector<512x2xf32>
    %4 = tpu.matmul %2, %3, %cst_5 {dimension_numbers = #tpu.dot_dimension_numbers<[1], [0], [0], [1], [0, 0, 1, 1], [], []>} : vector<512x32xf32>, vector<32x2xf32>, vector<512x2xf32> -> vector<512x2xf32>
    %c0_6 = arith.constant 0 : index
    %c0_7 = arith.constant 0 : index
    %5 = vector.load %arg4[%c0_6, %c0_7] : memref<512x32xf32, #tpu.memory_space<vmem>>, vector<512x32xf32>
    tpu.vector_store %arg4[%c0_6, %c0_7], %2 {strides = array<i32>} : memref<512x32xf32, #tpu.memory_space<vmem>>, vector<512x32xf32>,
    %6 = vector.extract_strided_slice %4 {offsets = [0, 0], sizes = [512, 1], strides = [1, 1]} : vector<512x2xf32> to vector<512x1xf32>
    %c0_8 = arith.constant 0 : index
    %c0_9 = arith.constant 0 : index
    %7 = vector.load %arg5[%c0_8, %c0_9] : memref<512x1xf32, #tpu.memory_space<vmem>>, vector<512x1xf32>
    tpu.vector_store %arg5[%c0_8, %c0_9], %6 {strides = array<i32>} : memref<512x1xf32, #tpu.memory_space<vmem>>, vector<512x1xf32>,
    %8 = vector.extract_strided_slice %4 {offsets = [0, 1], sizes = [512, 1], strides = [1, 1]} : vector<512x2xf32> to vector<512x1xf32>
    %9 = tpu.transpose %8, [1, 0] : vector<512x1xf32> -> vector<1x512xf32>
    %c0_10 = arith.constant 0 : index
    %c0_11 = arith.constant 0 : index
    %10 = vector.load %arg6[%c0_10, %c0_11] : memref<1x512xf32, #tpu.memory_space<vmem>>, vector<1x512xf32>
    tpu.vector_store %arg6[%c0_10, %c0_11], %9 {strides = array<i32>} : memref<1x512xf32, #tpu.memory_space<vmem>>, vector<1x512xf32>,
    return
  }
  func.func @transform_0(%arg0: i32) -> (i32, i32) {
    %c0_i32 = arith.constant 0 : i32
    %c0_i32_0 = arith.constant 0 : i32
    %c0_i32_1 = arith.constant 0 : i32
    return %c0_i32, %c0_i32_0 : i32, i32
  }
  func.func @transform_1(%arg0: i32) -> (i32, i32) {
    %c0_i32 = arith.constant 0 : i32
    %c0_i32_0 = arith.constant 0 : i32
    %c0_i32_1 = arith.constant 0 : i32
    return %c0_i32, %c0_i32_0 : i32, i32
  }
  func.func @transform_2(%arg0: i32) -> (i32, i32) {
    %c0_i32 = arith.constant 0 : i32
    %c0_i32_0 = arith.constant 0 : i32
    %c0_i32_1 = arith.constant 0 : i32
    return %c0_i32, %c0_i32_0 : i32, i32
  }
  func.func @transform_3(%arg0: i32) -> (i32, i32) {
    %c0_i32 = arith.constant 0 : i32
    %c0_i32_0 = arith.constant 0 : i32
    %c0_i32_1 = arith.constant 0 : i32
    return %c0_i32, %c0_i32_0 : i32, i32
  }
  func.func @transform_4(%arg0: i32) -> (i32, i32) {
    %c0_i32 = arith.constant 0 : i32
    %c0_i32_0 = arith.constant 0 : i32
    %c0_i32_1 = arith.constant 0 : i32
    return %c0_i32, %c0_i32_0 : i32, i32
  }
  func.func @transform_5(%arg0: i32) -> (i32, i32) {
    %c0_i32 = arith.constant 0 : i32
    %c0_i32_0 = arith.constant 0 : i32
    %c0_i32_1 = arith.constant 0 : i32
    return %c0_i32, %c0_i32_0 : i32, i32
  }
}

</mosaic_0001>

<bundles_post_ra>
// kernel: tpu_custom_call.1
= control target key start
LH: loop header
LB: loop body
LE: loop exit
PB: predicated region body
PF: predicated region fallthrough
CT: control target
= control target key end

     0   :  { %s2664_s0 = inlined_call_operand.vmem [shape: f32[512,32], index: 0, kind: input, shape index: {}]   ;;  %s2665_s1 = inlined_call_operand.vmem [shape: f32[32,32], index: 1, kind: input, shape index: {}]   ;;  %s2666_s2 = inlined_call_operand.vmem [shape: f32[32,2], index: 2, kind: input, shape index: {}]   ;;  %s2667_s3 = inlined_call_operand.vmem [shape: f32[512,32], index: 3, kind: output, shape index: {0}]   ;;  %s2668_s4 = inlined_call_operand.vmem [shape: f32[512,1], index: 4, kind: output, shape index: {1}]   ;;  %s2669_s5 = inlined_call_operand.hbm [shape: f32[1,512], index: 5, kind: output, shape index: {2}]  }
   0x1   :  { %v85_v0 = vld [vmem:[%s2665_s1 + $0x18] sm:$0xff]  ;;  %v84_v1 = vld [vmem:[%s2665_s1 + $0x10] sm:$0xff]  ;;  %v83_v2 = vld [vmem:[%s2665_s1 + $0x8] sm:$0xff] }
   0x2   :  { %291 = vmatpush.msra.mxu0 %v85_v0  ;;  %1577 = vmatpush.msra.mxu2 %v85_v0  ;;  %v82_v3 = vld [vmem:[%s2665_s1] sm:$0xff] }
   0x4   :  { %292 = vmatpush.msra.mxu0 %v84_v1  ;;  %1578 = vmatpush.msra.mxu2 %v84_v1 }
   0x5   :  { %11 = vsyncpa [#allocation3], 0  ;;  %v18_v4 = vld [vmem:[%s2664_s0] sm:$0xff]  ;;  %vm86_vm0 = vcmask 261120   ;;  %v19_v6 = vld [vmem:[%s2664_s0 + $0x8] sm:$0xff]  ;;  %vm957_vm1 = vcmask 7168  }
   0x6   :  { %293 = vmatpush.msra.mxu0 %v83_v2  ;;  %1579 = vmatpush.msra.mxu2 %v83_v2  ;;  %v50_v5 = vld [vmem:[%s2664_s0 + $0x100] sm:$0xff]  ;;  %v51_v7 = vld [vmem:[%s2664_s0 + $0x108] sm:$0xff]  ;;  %v20_v8 = vld [vmem:[%s2664_s0 + $0x10] sm:$0xff]  ;;  %vm1413_vm2 = vcmask 1040384   ;;  %vm1415_vm3 = vcmask 1042434   ;;  %s1436_s14 = sshll.u32 %s2669_s5, 4  ;;  %s1437_s14 = int_to_ptr.hbm [resolvable:$true] %s1436_s14 }
   0x7   :  { %v52_v9 = vld [vmem:[%s2664_s0 + $0x110] sm:$0xff]  ;;  %v21_v10 = vld [vmem:[%s2664_s0 + $0x18] sm:$0xff]  ;;  %v22_v12 = vld [vmem:[%s2664_s0 + $0x20] sm:$0xff]  ;;  %vm1417_vm4 = vcmask 1041408  }
   0x8   :  { %294 = vmatpush.msra.mxu0 %v82_v3  ;;  %1580 = vmatpush.msra.mxu2 %v82_v3  ;;  %v53_v11 = vld [vmem:[%s2664_s0 + $0x118] sm:$0xff]  ;;  %v54_v13 = vld [vmem:[%s2664_s0 + $0x120] sm:$0xff]  ;;  %v55_v14 = vld [vmem:[%s2664_s0 + $0x128] sm:$0xff] }
   0x9   :  { %1449 = vmatmul.msk.f32.vlgmr.msra.gmra.mxu0 %vm86_vm0, %v18_v4  ;;  %1481 = vmatmul.msk.f32.vlgmr.msra.gmra.mxu2 %vm86_vm0, %v50_v5  ;;  %v23_v15 = vld [vmem:[%s2664_s0 + $0x28] sm:$0xff]  ;;  %v56_v16 = vld [vmem:[%s2664_s0 + $0x130] sm:$0xff]  ;;  %v57_v18 = vld [vmem:[%s2664_s0 + $0x138] sm:$0xff] }
   0xa   :  { %v24_v17 = vld [vmem:[%s2664_s0 + $0x30] sm:$0xff]  ;;  %v25_v19 = vld [vmem:[%s2664_s0 + $0x38] sm:$0xff]  ;;  %v58_v20 = vld [vmem:[%s2664_s0 + $0x140] sm:$0xff] }
   0xb   :  { %v26_v21 = vld [vmem:[%s2664_s0 + $0x40] sm:$0xff]  ;;  %v59_v22 = vld [vmem:[%s2664_s0 + $0x148] sm:$0xff]  ;;  %v60_v24 = vld [vmem:[%s2664_s0 + $0x150] sm:$0xff] }
   0xc   :  { %v27_v23 = vld [vmem:[%s2664_s0 + $0x48] sm:$0xff]  ;;  %v28_v25 = vld [vmem:[%s2664_s0 + $0x50] sm:$0xff]  ;;  %v491_v26 = vld [vmem:[%s2666_s2 + $0x18] sm:$0xff] }
   0xd   :  { %696 = vmatpush.msra.mxu1 %v491_v26  ;;  %1581 = vmatpush.msra.mxu3 %v491_v26  ;;  %v61_v27 = vld [vmem:[%s2664_s0 + $0x158] sm:$0xff]  ;;  %v490_v29 = vld [vmem:[%s2666_s2 + $0x10] sm:$0xff]  ;;  %v489_v30 = vld [vmem:[%s2666_s2 + $0x8] sm:$0xff] }
   0xe   :  { %v29_v28 = vld [vmem:[%s2664_s0 + $0x58] sm:$0xff]  ;;  %v488_v31 = vld [vmem:[%s2666_s2] sm:$0xff]  ;;  %v63_v34 = vld [vmem:[%s2664_s0 + $0x168] sm:$0xff] }
   0xf   :  { %697 = vmatpush.msra.mxu1 %v490_v29  ;;  %1582 = vmatpush.msra.mxu3 %v490_v29  ;;  %v62_v32 = vld [vmem:[%s2664_s0 + $0x160] sm:$0xff]  ;;  %v31_v35 = vld [vmem:[%s2664_s0 + $0x68] sm:$0xff]  ;;  %v64_v36 = vld [vmem:[%s2664_s0 + $0x170] sm:$0xff] }
  0x10   :  { %v30_v33 = vld [vmem:[%s2664_s0 + $0x60] sm:$0xff]  ;;  %v32_v37 = vld [vmem:[%s2664_s0 + $0x70] sm:$0xff]  ;;  %v65_v38 = vld [vmem:[%s2664_s0 + $0x178] sm:$0xff] }
  0x11   :  { %1450 = vmatmul.msk.f32.gmra.mxu0 %vm86_vm0, %v19_v6  ;;  %1482 = vmatmul.msk.f32.gmra.mxu2 %vm86_vm0, %v51_v7  ;;  %v33_v39 = vld [vmem:[%s2664_s0 + $0x78] sm:$0xff]  ;;  %v66_v41 = vld [vmem:[%s2664_s0 + $0x180] sm:$0xff]  ;;  %v67_v45 = vld [vmem:[%s2664_s0 + $0x188] sm:$0xff] }
  0x12   :  { %698 = vmatpush.msra.mxu1 %v489_v30  ;;  %1583 = vmatpush.msra.mxu3 %v489_v30  ;;  %v34_v42 = vld [vmem:[%s2664_s0 + $0x80] sm:$0xff]  ;;  %v35_v46 = vld [vmem:[%s2664_s0 + $0x88] sm:$0xff]  ;;  %v68_v49 = vld [vmem:[%s2664_s0 + $0x190] sm:$0xff] }
  0x13   :  { %v36_v50 = vld [vmem:[%s2664_s0 + $0x90] sm:$0xff]  ;;  %v69_v53 = vld [vmem:[%s2664_s0 + $0x198] sm:$0xff]  ;;  %v70_v57 = vld [vmem:[%s2664_s0 + $0x1a0] sm:$0xff] }
  0x14   :  { %699 = vmatpush.msra.mxu1 %v488_v31  ;;  %1584 = vmatpush.msra.mxu3 %v488_v31  ;;  %v37_v54 = vld [vmem:[%s2664_s0 + $0x98] sm:$0xff]  ;;  %v38_v58 = vld [vmem:[%s2664_s0 + $0xa0] sm:$0xff]  ;;  %v71_v60 = vld [vmem:[%s2664_s0 + $0x1a8] sm:$0xff] }
  0x15   :  { %v39_v62 = vld [vmem:[%s2664_s0 + $0xa8] sm:$0xff]  ;;  %v72_v0 = vld [vmem:[%s2664_s0 + $0x1b0] sm:$0xff]  ;;  %v73_v4 = vld [vmem:[%s2664_s0 + $0x1b8] sm:$0xff] }
  0x16   :  { %v40_v2 = vld [vmem:[%s2664_s0 + $0xb0] sm:$0xff]  ;;  %v41_v6 = vld [vmem:[%s2664_s0 + $0xb8] sm:$0xff]  ;;  %v46_v26 = vld [vmem:[%s2664_s0 + $0xe0] sm:$0xff] }
  0x17   :  { %v47_v30 = vld [vmem:[%s2664_s0 + $0xe8] sm:$0xff] }
  0x19   :  { %1451 = vmatmul.msk.f32.gmra.mxu0 %vm86_vm0, %v20_v8  ;;  %1483 = vmatmul.msk.f32.gmra.mxu2 %vm86_vm0, %v52_v9  ;;  %v74_v8 = vld [vmem:[%s2664_s0 + $0x1c0] sm:$0xff] }
  0x21   :  { %1452 = vmatmul.msk.f32.gmra.mxu0 %vm86_vm0, %v21_v10  ;;  %1484 = vmatmul.msk.f32.gmra.mxu2 %vm86_vm0, %v53_v11  ;;  %v42_v10 = vld [vmem:[%s2664_s0 + $0xc0] sm:$0xff] }
  0x29   :  { %1453 = vmatmul.msk.f32.gmra.mxu0 %vm86_vm0, %v22_v12  ;;  %1485 = vmatmul.msk.f32.gmra.mxu2 %vm86_vm0, %v54_v13  ;;  %v75_v12 = vld [vmem:[%s2664_s0 + $0x1c8] sm:$0xff] }
  0x31   :  { %1486 = vmatmul.msk.f32.gmra.mxu2 %vm86_vm0, %v55_v14  ;;  %1454 = vmatmul.msk.f32.gmra.mxu0 %vm86_vm0, %v23_v15  ;;  %v43_v14 = vld [vmem:[%s2664_s0 + $0xc8] sm:$0xff] }
  0x39   :  { %1487 = vmatmul.msk.f32.gmra.mxu2 %vm86_vm0, %v56_v16  ;;  %1455 = vmatmul.msk.f32.gmra.mxu0 %vm86_vm0, %v24_v17  ;;  %v76_v16 = vld [vmem:[%s2664_s0 + $0x1d0] sm:$0xff] }
  0x41   :  { %1488 = vmatmul.msk.f32.gmra.mxu2 %vm86_vm0, %v57_v18  ;;  %1456 = vmatmul.msk.f32.gmra.mxu0 %vm86_vm0, %v25_v19  ;;  %v44_v18 = vld [vmem:[%s2664_s0 + $0xd0] sm:$0xff] }
  0x49   :  { %1489 = vmatmul.msk.f32.gmra.mxu2 %vm86_vm0, %v58_v20  ;;  %1457 = vmatmul.msk.f32.gmra.mxu0 %vm86_vm0, %v26_v21  ;;  %v77_v20 = vld [vmem:[%s2664_s0 + $0x1d8] sm:$0xff] }
  0x51   :  { %1490 = vmatmul.msk.f32.gmra.mxu2 %vm86_vm0, %v59_v22  ;;  %1458 = vmatmul.msk.f32.gmra.mxu0 %vm86_vm0, %v27_v23  ;;  %v45_v22 = vld [vmem:[%s2664_s0 + $0xd8] sm:$0xff] }
  0x59   :  { %1491 = vmatmul.msk.f32.gmra.mxu2 %vm86_vm0, %v60_v24  ;;  %1459 = vmatmul.msk.f32.gmra.mxu0 %vm86_vm0, %v28_v25  ;;  %v78_v24 = vld [vmem:[%s2664_s0 + $0x1e0] sm:$0xff] }
  0x61   :  { %1492 = vmatmul.msk.f32.gmra.mxu2 %vm86_vm0, %v61_v27  ;;  %1460 = vmatmul.msk.f32.gmra.mxu0 %vm86_vm0, %v29_v28  ;;  %v79_v28 = vld [vmem:[%s2664_s0 + $0x1e8] sm:$0xff] }
  0x69   :  { %1493 = vmatmul.msk.f32.gmra.mxu2 %vm86_vm0, %v62_v32  ;;  %1461 = vmatmul.msk.f32.gmra.mxu0 %vm86_vm0, %v30_v33  ;;  %v80_v32 = vld [vmem:[%s2664_s0 + $0x1f0] sm:$0xff] }
  0x71   :  { %1494 = vmatmul.msk.f32.gmra.mxu2 %vm86_vm0, %v63_v34  ;;  %1462 = vmatmul.msk.f32.gmra.mxu0 %vm86_vm0, %v31_v35  ;;  %v48_v34 = vld [vmem:[%s2664_s0 + $0xf0] sm:$0xff] }
  0x79   :  { %1495 = vmatmul.msk.f32.gmra.mxu2 %vm86_vm0, %v64_v36  ;;  %1463 = vmatmul.msk.f32.gmra.mxu0 %vm86_vm0, %v32_v37  ;;  %v81_v36 = vld [vmem:[%s2664_s0 + $0x1f8] sm:$0xff] }
  0x81   :  { %1496 = vmatmul.msk.f32.gmra.mxu2 %vm86_vm0, %v65_v38  ;;  %1464 = vmatmul.msk.f32.gmra.mxu0 %vm86_vm0, %v33_v39  ;;  %v49_v38 = vld [vmem:[%s2664_s0 + $0xf8] sm:$0xff]  ;;  %s1613_s0 = smov 127  }
  0x86   :  { %v296_v40 = vpop.f32.mrf.mxu0 }
  0x87   :  { %893 = vst.msk [vmem:[%s2667_s3] sm:$0xff] %vm86_vm0, %v296_v40  ;;  %1513 = vmatmul.msk.f32.vlgmr.msra.gmra.mxu1 %vm86_vm0, %v296_v40 }
  0x89   :  { %1497 = vmatmul.msk.f32.gmra.mxu2 %vm86_vm0, %v66_v41  ;;  %1465 = vmatmul.msk.f32.gmra.mxu0 %vm86_vm0, %v34_v42 }
  0x8c   :  { %v392_v43 = vpop.f32.mrf.mxu2 }
  0x8d   :  { %925 = vst.msk [vmem:[%s2667_s3 + $0x100] sm:$0xff] %vm86_vm0, %v392_v43  ;;  %1545 = vmatmul.msk.f32.vlgmr.msra.gmra.mxu3 %vm86_vm0, %v392_v43 }
  0x8e   :  { %v299_v44 = vpop.f32.mrf.mxu0 }
  0x8f   :  { %894 = vst.msk [vmem:[%s2667_s3 + $0x8] sm:$0xff] %vm86_vm0, %v299_v44  ;;  %1514 = vmatmul.msk.f32.gmra.mxu1 %vm86_vm0, %v299_v44 }
  0x91   :  { %1498 = vmatmul.msk.f32.gmra.mxu2 %vm86_vm0, %v67_v45  ;;  %1466 = vmatmul.msk.f32.gmra.mxu0 %vm86_vm0, %v35_v46 }
  0x94   :  { %v395_v47 = vpop.f32.mrf.mxu2 }
  0x95   :  { %926 = vst.msk [vmem:[%s2667_s3 + $0x108] sm:$0xff] %vm86_vm0, %v395_v47  ;;  %1546 = vmatmul.msk.f32.gmra.mxu3 %vm86_vm0, %v395_v47 }
  0x96   :  { %v302_v48 = vpop.f32.mrf.mxu0 }
  0x97   :  { %895 = vst.msk [vmem:[%s2667_s3 + $0x10] sm:$0xff] %vm86_vm0, %v302_v48  ;;  %1515 = vmatmul.msk.f32.gmra.mxu1 %vm86_vm0, %v302_v48 }
  0x99   :  { %1499 = vmatmul.msk.f32.gmra.mxu2 %vm86_vm0, %v68_v49  ;;  %1467 = vmatmul.msk.f32.gmra.mxu0 %vm86_vm0, %v36_v50 }
  0x9c   :  { %v398_v51 = vpop.f32.mrf.mxu2 }
  0x9d   :  { %927 = vst.msk [vmem:[%s2667_s3 + $0x110] sm:$0xff] %vm86_vm0, %v398_v51  ;;  %1547 = vmatmul.msk.f32.gmra.mxu3 %vm86_vm0, %v398_v51 }
  0x9e   :  { %v305_v52 = vpop.f32.mrf.mxu0 }
  0x9f   :  { %896 = vst.msk [vmem:[%s2667_s3 + $0x18] sm:$0xff] %vm86_vm0, %v305_v52  ;;  %1516 = vmatmul.msk.f32.gmra.mxu1 %vm86_vm0, %v305_v52 }
  0xa1   :  { %1500 = vmatmul.msk.f32.gmra.mxu2 %vm86_vm0, %v69_v53  ;;  %1468 = vmatmul.msk.f32.gmra.mxu0 %vm86_vm0, %v37_v54 }
  0xa4   :  { %v401_v55 = vpop.f32.mrf.mxu2 }
  0xa5   :  { %928 = vst.msk [vmem:[%s2667_s3 + $0x118] sm:$0xff] %vm86_vm0, %v401_v55  ;;  %1548 = vmatmul.msk.f32.gmra.mxu3 %vm86_vm0, %v401_v55 }
  0xa6   :  { %v308_v56 = vpop.f32.mrf.mxu0 }
  0xa7   :  { %897 = vst.msk [vmem:[%s2667_s3 + $0x20] sm:$0xff] %vm86_vm0, %v308_v56  ;;  %1517 = vmatmul.msk.f32.gmra.mxu1 %vm86_vm0, %v308_v56 }
  0xa9   :  { %1501 = vmatmul.msk.f32.gmra.mxu2 %vm86_vm0, %v70_v57  ;;  %1469 = vmatmul.msk.f32.gmra.mxu0 %vm86_vm0, %v38_v58 }
  0xac   :  { %v404_v59 = vpop.f32.mrf.mxu2 }
  0xad   :  { %929 = vst.msk [vmem:[%s2667_s3 + $0x120] sm:$0xff] %vm86_vm0, %v404_v59  ;;  %1549 = vmatmul.msk.f32.gmra.mxu3 %vm86_vm0, %v404_v59 }
  0xae   :  { %v311_v61 = vpop.f32.mrf.mxu0 }
  0xaf   :  { %898 = vst.msk [vmem:[%s2667_s3 + $0x28] sm:$0xff] %vm86_vm0, %v311_v61  ;;  %1518 = vmatmul.msk.f32.gmra.mxu1 %vm86_vm0, %v311_v61 }
  0xb1   :  { %1502 = vmatmul.msk.f32.gmra.mxu2 %vm86_vm0, %v71_v60  ;;  %1470 = vmatmul.msk.f32.gmra.mxu0 %vm86_vm0, %v39_v62 }
  0xb4   :  { %v407_v63 = vpop.f32.mrf.mxu2 }
  0xb5   :  { %930 = vst.msk [vmem:[%s2667_s3 + $0x128] sm:$0xff] %vm86_vm0, %v407_v63  ;;  %1550 = vmatmul.msk.f32.gmra.mxu3 %vm86_vm0, %v407_v63 }
  0xb6   :  { %v314_v1 = vpop.f32.mrf.mxu0 }
  0xb7   :  { %899 = vst.msk [vmem:[%s2667_s3 + $0x30] sm:$0xff] %vm86_vm0, %v314_v1  ;;  %1519 = vmatmul.msk.f32.gmra.mxu1 %vm86_vm0, %v314_v1 }
  0xb9   :  { %1503 = vmatmul.msk.f32.gmra.mxu2 %vm86_vm0, %v72_v0  ;;  %1471 = vmatmul.msk.f32.gmra.mxu0 %vm86_vm0, %v40_v2 }
  0xbc   :  { %v410_v3 = vpop.f32.mrf.mxu2 }
  0xbd   :  { %931 = vst.msk [vmem:[%s2667_s3 + $0x130] sm:$0xff] %vm86_vm0, %v410_v3  ;;  %1551 = vmatmul.msk.f32.gmra.mxu3 %vm86_vm0, %v410_v3 }
  0xbe   :  { %v317_v5 = vpop.f32.mrf.mxu0 }
  0xbf   :  { %900 = vst.msk [vmem:[%s2667_s3 + $0x38] sm:$0xff] %vm86_vm0, %v317_v5  ;;  %1520 = vmatmul.msk.f32.gmra.mxu1 %vm86_vm0, %v317_v5 }
  0xc1   :  { %1504 = vmatmul.msk.f32.gmra.mxu2 %vm86_vm0, %v73_v4  ;;  %1472 = vmatmul.msk.f32.gmra.mxu0 %vm86_vm0, %v41_v6 }
  0xc4   :  { %v413_v7 = vpop.f32.mrf.mxu2 }
  0xc5   :  { %932 = vst.msk [vmem:[%s2667_s3 + $0x138] sm:$0xff] %vm86_vm0, %v413_v7  ;;  %1552 = vmatmul.msk.f32.gmra.mxu3 %vm86_vm0, %v413_v7 }
  0xc6   :  { %v320_v9 = vpop.f32.mrf.mxu0 }
  0xc7   :  { %901 = vst.msk [vmem:[%s2667_s3 + $0x40] sm:$0xff] %vm86_vm0, %v320_v9  ;;  %1521 = vmatmul.msk.f32.gmra.mxu1 %vm86_vm0, %v320_v9 }
  0xc9   :  { %1505 = vmatmul.msk.f32.gmra.mxu2 %vm86_vm0, %v74_v8  ;;  %1473 = vmatmul.msk.f32.gmra.mxu0 %vm86_vm0, %v42_v10 }
  0xcc   :  { %v416_v11 = vpop.f32.mrf.mxu2 }
  0xcd   :  { %933 = vst.msk [vmem:[%s2667_s3 + $0x140] sm:$0xff] %vm86_vm0, %v416_v11  ;;  %1553 = vmatmul.msk.f32.gmra.mxu3 %vm86_vm0, %v416_v11 }
  0xce   :  { %v323_v13 = vpop.f32.mrf.mxu0 }
  0xcf   :  { %902 = vst.msk [vmem:[%s2667_s3 + $0x48] sm:$0xff] %vm86_vm0, %v323_v13  ;;  %1522 = vmatmul.msk.f32.gmra.mxu1 %vm86_vm0, %v323_v13 }
  0xd1   :  { %1506 = vmatmul.msk.f32.gmra.mxu2 %vm86_vm0, %v75_v12  ;;  %1474 = vmatmul.msk.f32.gmra.mxu0 %vm86_vm0, %v43_v14 }
  0xd4   :  { %v419_v15 = vpop.f32.mrf.mxu2 }
  0xd5   :  { %934 = vst.msk [vmem:[%s2667_s3 + $0x148] sm:$0xff] %vm86_vm0, %v419_v15  ;;  %1554 = vmatmul.msk.f32.gmra.mxu3 %vm86_vm0, %v419_v15 }
  0xd6   :  { %v326_v17 = vpop.f32.mrf.mxu0 }
  0xd7   :  { %903 = vst.msk [vmem:[%s2667_s3 + $0x50] sm:$0xff] %vm86_vm0, %v326_v17  ;;  %1523 = vmatmul.msk.f32.gmra.mxu1 %vm86_vm0, %v326_v17 }
  0xd9   :  { %1507 = vmatmul.msk.f32.gmra.mxu2 %vm86_vm0, %v76_v16  ;;  %1475 = vmatmul.msk.f32.gmra.mxu0 %vm86_vm0, %v44_v18 }
  0xdc   :  { %v422_v19 = vpop.f32.mrf.mxu2 }
  0xdd   :  { %935 = vst.msk [vmem:[%s2667_s3 + $0x150] sm:$0xff] %vm86_vm0, %v422_v19  ;;  %1555 = vmatmul.msk.f32.gmra.mxu3 %vm86_vm0, %v422_v19 }
  0xde   :  { %v329_v21 = vpop.f32.mrf.mxu0 }
  0xdf   :  { %904 = vst.msk [vmem:[%s2667_s3 + $0x58] sm:$0xff] %vm86_vm0, %v329_v21  ;;  %1524 = vmatmul.msk.f32.gmra.mxu1 %vm86_vm0, %v329_v21 }
  0xe1   :  { %1508 = vmatmul.msk.f32.gmra.mxu2 %vm86_vm0, %v77_v20  ;;  %1476 = vmatmul.msk.f32.gmra.mxu0 %vm86_vm0, %v45_v22 }
  0xe4   :  { %v425_v23 = vpop.f32.mrf.mxu2 }
  0xe5   :  { %936 = vst.msk [vmem:[%s2667_s3 + $0x158] sm:$0xff] %vm86_vm0, %v425_v23  ;;  %1556 = vmatmul.msk.f32.gmra.mxu3 %vm86_vm0, %v425_v23 }
  0xe6   :  { %v332_v25 = vpop.f32.mrf.mxu0 }
  0xe7   :  { %905 = vst.msk [vmem:[%s2667_s3 + $0x60] sm:$0xff] %vm86_vm0, %v332_v25  ;;  %1525 = vmatmul.msk.f32.gmra.mxu1 %vm86_vm0, %v332_v25 }
  0xe9   :  { %1509 = vmatmul.msk.f32.gmra.mxu2 %vm86_vm0, %v78_v24  ;;  %1477 = vmatmul.msk.f32.gmra.mxu0 %vm86_vm0, %v46_v26 }
  0xec   :  { %v428_v27 = vpop.f32.mrf.mxu2 }
  0xed   :  { %937 = vst.msk [vmem:[%s2667_s3 + $0x160] sm:$0xff] %vm86_vm0, %v428_v27  ;;  %1557 = vmatmul.msk.f32.gmra.mxu3 %vm86_vm0, %v428_v27 }
  0xee   :  { %v335_v29 = vpop.f32.mrf.mxu0 }
  0xef   :  { %906 = vst.msk [vmem:[%s2667_s3 + $0x68] sm:$0xff] %vm86_vm0, %v335_v29  ;;  %1526 = vmatmul.msk.f32.gmra.mxu1 %vm86_vm0, %v335_v29 }
  0xf1   :  { %1510 = vmatmul.msk.f32.gmra.mxu2 %vm86_vm0, %v79_v28  ;;  %1478 = vmatmul.msk.f32.gmra.mxu0 %vm86_vm0, %v47_v30 }
  0xf4   :  { %v431_v31 = vpop.f32.mrf.mxu2 }
  0xf5   :  { %938 = vst.msk [vmem:[%s2667_s3 + $0x168] sm:$0xff] %vm86_vm0, %v431_v31  ;;  %1558 = vmatmul.msk.f32.gmra.mxu3 %vm86_vm0, %v431_v31 }
  0xf6   :  { %v338_v33 = vpop.f32.mrf.mxu0 }
  0xf7   :  { %907 = vst.msk [vmem:[%s2667_s3 + $0x70] sm:$0xff] %vm86_vm0, %v338_v33  ;;  %1527 = vmatmul.msk.f32.gmra.mxu1 %vm86_vm0, %v338_v33 }
  0xf9   :  { %1511 = vmatmul.msk.f32.gmra.mxu2 %vm86_vm0, %v80_v32  ;;  %1479 = vmatmul.msk.f32.gmra.mxu0 %vm86_vm0, %v48_v34 }
  0xfc   :  { %v434_v35 = vpop.f32.mrf.mxu2 }
  0xfd   :  { %939 = vst.msk [vmem:[%s2667_s3 + $0x170] sm:$0xff] %vm86_vm0, %v434_v35  ;;  %1559 = vmatmul.msk.f32.gmra.mxu3 %vm86_vm0, %v434_v35 }
  0xfe   :  { %v341_v37 = vpop.f32.mrf.mxu0 }
  0xff   :  { %908 = vst.msk [vmem:[%s2667_s3 + $0x78] sm:$0xff] %vm86_vm0, %v341_v37  ;;  %1528 = vmatmul.msk.f32.gmra.mxu1 %vm86_vm0, %v341_v37 }
 0x101   :  { %1512 = vmatmul.msk.f32.gmra.mxu2 %vm86_vm0, %v81_v36  ;;  %1480 = vmatmul.msk.f32.gmra.mxu0 %vm86_vm0, %v49_v38 }
 0x104   :  { %v437_v39 = vpop.f32.mrf.mxu2  ;;  %v701_v40 = vpop.f32.mrf.mxu1 }
 0x105   :  { %940 = vst.msk [vmem:[%s2667_s3 + $0x178] sm:$0xff] %vm86_vm0, %v437_v39  ;;  %1560 = vmatmul.msk.f32.gmra.mxu3 %vm86_vm0, %v437_v39  ;;  %1086 = vrot.lane.b32.xlu0 %v701_v40, %s1613_s0 }
 0x106   :  { %958 = vst.msk [vmem:[%s2668_s4] sm:$0xff] %vm957_vm1, %v701_v40  ;;  %v344_v41 = vpop.f32.mrf.mxu0 }
 0x107   :  { %909 = vst.msk [vmem:[%s2667_s3 + $0x80] sm:$0xff] %vm86_vm0, %v344_v41  ;;  %1529 = vmatmul.msk.f32.gmra.mxu1 %vm86_vm0, %v344_v41 }
 0x10c   :  { %v440_v42 = vpop.f32.mrf.mxu2  ;;  %v704_v43 = vpop.f32.mrf.mxu1 }
 0x10d   :  { %941 = vst.msk [vmem:[%s2667_s3 + $0x180] sm:$0xff] %vm86_vm0, %v440_v42  ;;  %1561 = vmatmul.msk.f32.gmra.mxu3 %vm86_vm0, %v440_v42  ;;  %1088 = vrot.lane.b32.xlu0 %v704_v43, %s1613_s0 }
 0x10e   :  { %959 = vst.msk [vmem:[%s2668_s4 + $0x8] sm:$0xff] %vm957_vm1, %v704_v43  ;;  %v347_v44 = vpop.f32.mrf.mxu0 }
 0x10f   :  { %910 = vst.msk [vmem:[%s2667_s3 + $0x88] sm:$0xff] %vm86_vm0, %v347_v44  ;;  %1530 = vmatmul.msk.f32.gmra.mxu1 %vm86_vm0, %v347_v44 }
 0x110   :  { %v797_v45 = vpop.f32.mrf.mxu3 }
 0x111   :  { %990 = vst.msk [vmem:[%s2668_s4 + $0x100] sm:$0xff] %vm957_vm1, %v797_v45  ;;  %1150 = vrot.lane.b32.xlu2 %v797_v45, %s1613_s0 }
 0x114   :  { %v443_v46 = vpop.f32.mrf.mxu2  ;;  %v707_v47 = vpop.f32.mrf.mxu1 }
 0x115   :  { %942 = vst.msk [vmem:[%s2667_s3 + $0x188] sm:$0xff] %vm86_vm0, %v443_v46  ;;  %1562 = vmatmul.msk.f32.gmra.mxu3 %vm86_vm0, %v443_v46  ;;  %1090 = vrot.lane.b32.xlu1 %v707_v47, %s1613_s0 }
 0x116   :  { %960 = vst.msk [vmem:[%s2668_s4 + $0x10] sm:$0xff] %vm957_vm1, %v707_v47  ;;  %v350_v48 = vpop.f32.mrf.mxu0 }
 0x117   :  { %911 = vst.msk [vmem:[%s2667_s3 + $0x90] sm:$0xff] %vm86_vm0, %v350_v48  ;;  %1531 = vmatmul.msk.f32.gmra.mxu1 %vm86_vm0, %v350_v48 }
 0x118   :  { %v800_v49 = vpop.f32.mrf.mxu3 }
 0x119   :  { %991 = vst.msk [vmem:[%s2668_s4 + $0x108] sm:$0xff] %vm957_vm1, %v800_v49  ;;  %1152 = vrot.lane.b32.xlu0 %v800_v49, %s1613_s0 }
 0x11c   :  { %v446_v50 = vpop.f32.mrf.mxu2  ;;  %v710_v51 = vpop.f32.mrf.mxu1 }
 0x11d   :  { %943 = vst.msk [vmem:[%s2667_s3 + $0x190] sm:$0xff] %vm86_vm0, %v446_v50  ;;  %1563 = vmatmul.msk.f32.gmra.mxu3 %vm86_vm0, %v446_v50  ;;  %1092 = vrot.lane.b32.xlu1 %v710_v51, %s1613_s0 }
 0x11e   :  { %961 = vst.msk [vmem:[%s2668_s4 + $0x18] sm:$0xff] %vm957_vm1, %v710_v51  ;;  %v353_v52 = vpop.f32.mrf.mxu0 }
 0x11f   :  { %912 = vst.msk [vmem:[%s2667_s3 + $0x98] sm:$0xff] %vm86_vm0, %v353_v52  ;;  %1532 = vmatmul.msk.f32.gmra.mxu1 %vm86_vm0, %v353_v52 }
 0x120   :  { %v803_v53 = vpop.f32.mrf.mxu3 }
 0x121   :  { %992 = vst.msk [vmem:[%s2668_s4 + $0x110] sm:$0xff] %vm957_vm1, %v803_v53 }
 0x124   :  { %v449_v54 = vpop.f32.mrf.mxu2  ;;  %v713_v55 = vpop.f32.mrf.mxu1 }
 0x125   :  { %944 = vst.msk [vmem:[%s2667_s3 + $0x198] sm:$0xff] %vm86_vm0, %v449_v54  ;;  %1564 = vmatmul.msk.f32.gmra.mxu3 %vm86_vm0, %v449_v54  ;;  %1154 = vrot.lane.b32.xlu1 %v803_v53, %s1613_s0 }
 0x126   :  { %962 = vst.msk [vmem:[%s2668_s4 + $0x20] sm:$0xff] %vm957_vm1, %v713_v55  ;;  %1094 = vrot.lane.b32.xlu2 %v713_v55, %s1613_s0  ;;  %v356_v56 = vpop.f32.mrf.mxu0 }
 0x127   :  { %913 = vst.msk [vmem:[%s2667_s3 + $0xa0] sm:$0xff] %vm86_vm0, %v356_v56  ;;  %1533 = vmatmul.msk.f32.gmra.mxu1 %vm86_vm0, %v356_v56 }
 0x128   :  { %v806_v57 = vpop.f32.mrf.mxu3 }
 0x129   :  { %993 = vst.msk [vmem:[%s2668_s4 + $0x118] sm:$0xff] %vm957_vm1, %v806_v57 }
 0x12c   :  { %v452_v58 = vpop.f32.mrf.mxu2  ;;  %v716_v59 = vpop.f32.mrf.mxu1 }
 0x12d   :  { %945 = vst.msk [vmem:[%s2667_s3 + $0x1a0] sm:$0xff] %vm86_vm0, %v452_v58  ;;  %1565 = vmatmul.msk.f32.gmra.mxu3 %vm86_vm0, %v452_v58 }
 0x12e   :  { %1156 = vrot.lane.b32.xlu2 %v806_v57, %s1613_s0  ;;  %963 = vst.msk [vmem:[%s2668_s4 + $0x28] sm:$0xff] %vm957_vm1, %v716_v59  ;;  %v359_v60 = vpop.f32.mrf.mxu0 }
 0x12f   :  { %914 = vst.msk [vmem:[%s2667_s3 + $0xa8] sm:$0xff] %vm86_vm0, %v359_v60  ;;  %1534 = vmatmul.msk.f32.gmra.mxu1 %vm86_vm0, %v359_v60 }
 0x130   :  { %v809_v61 = vpop.f32.mrf.mxu3 }
 0x131   :  { %994 = vst.msk [vmem:[%s2668_s4 + $0x120] sm:$0xff] %vm957_vm1, %v809_v61  ;;  %1158 = vrot.lane.b32.xlu0 %v809_v61, %s1613_s0 }
 0x134   :  { %v455_v62 = vpop.f32.mrf.mxu2  ;;  %v719_v63 = vpop.f32.mrf.mxu1 }
 0x135   :  { %946 = vst.msk [vmem:[%s2667_s3 + $0x1a8] sm:$0xff] %vm86_vm0, %v455_v62  ;;  %1566 = vmatmul.msk.f32.gmra.mxu3 %vm86_vm0, %v455_v62 }
 0x136   :  { %964 = vst.msk [vmem:[%s2668_s4 + $0x30] sm:$0xff] %vm957_vm1, %v719_v63  ;;  %1096 = vrot.lane.b32.xlu2 %v716_v59, %s1613_s0  ;;  %v362_v0 = vpop.f32.mrf.mxu0 }
 0x137   :  { %915 = vst.msk [vmem:[%s2667_s3 + $0xb0] sm:$0xff] %vm86_vm0, %v362_v0  ;;  %1535 = vmatmul.msk.f32.gmra.mxu1 %vm86_vm0, %v362_v0 }
 0x138   :  { %v812_v1 = vpop.f32.mrf.mxu3 }
 0x139   :  { %995 = vst.msk [vmem:[%s2668_s4 + $0x128] sm:$0xff] %vm957_vm1, %v812_v1  ;;  %1160 = vrot.lane.b32.xlu1 %v812_v1, %s1613_s0  ;;  %1098 = vrot.lane.b32.xlu0 %v719_v63, %s1613_s0 }
 0x13c   :  { %v458_v2 = vpop.f32.mrf.mxu2  ;;  %v722_v3 = vpop.f32.mrf.mxu1 }
 0x13d   :  { %947 = vst.msk [vmem:[%s2667_s3 + $0x1b0] sm:$0xff] %vm86_vm0, %v458_v2  ;;  %1567 = vmatmul.msk.f32.gmra.mxu3 %vm86_vm0, %v458_v2 }
 0x13e   :  { %965 = vst.msk [vmem:[%s2668_s4 + $0x38] sm:$0xff] %vm957_vm1, %v722_v3  ;;  %v365_v4 = vpop.f32.mrf.mxu0 }
 0x13f   :  { %916 = vst.msk [vmem:[%s2667_s3 + $0xb8] sm:$0xff] %vm86_vm0, %v365_v4  ;;  %1536 = vmatmul.msk.f32.gmra.mxu1 %vm86_vm0, %v365_v4 }
 0x140   :  { %v815_v5 = vpop.f32.mrf.mxu3 }
 0x141   :  { %996 = vst.msk [vmem:[%s2668_s4 + $0x130] sm:$0xff] %vm957_vm1, %v815_v5  ;;  %1162 = vrot.lane.b32.xlu2 %v815_v5, %s1613_s0  ;;  %1100 = vrot.lane.b32.xlu1 %v722_v3, %s1613_s0 }
 0x144   :  { %v461_v6 = vpop.f32.mrf.mxu2  ;;  %v725_v7 = vpop.f32.mrf.mxu1 }
 0x145   :  { %948 = vst.msk [vmem:[%s2667_s3 + $0x1b8] sm:$0xff] %vm86_vm0, %v461_v6  ;;  %1568 = vmatmul.msk.f32.gmra.mxu3 %vm86_vm0, %v461_v6 }
 0x146   :  { %966 = vst.msk [vmem:[%s2668_s4 + $0x40] sm:$0xff] %vm957_vm1, %v725_v7  ;;  %v368_v8 = vpop.f32.mrf.mxu0 }
 0x147   :  { %917 = vst.msk [vmem:[%s2667_s3 + $0xc0] sm:$0xff] %vm86_vm0, %v368_v8  ;;  %1537 = vmatmul.msk.f32.gmra.mxu1 %vm86_vm0, %v368_v8 }
 0x148   :  { %v818_v9 = vpop.f32.mrf.mxu3 }
 0x149   :  { %997 = vst.msk [vmem:[%s2668_s4 + $0x138] sm:$0xff] %vm957_vm1, %v818_v9  ;;  %1164 = vrot.lane.b32.xlu0 %v818_v9, %s1613_s0  ;;  %1102 = vrot.lane.b32.xlu2 %v725_v7, %s1613_s0 }
 0x14c   :  { %v464_v10 = vpop.f32.mrf.mxu2  ;;  %v728_v11 = vpop.f32.mrf.mxu1 }
 0x14d   :  { %949 = vst.msk [vmem:[%s2667_s3 + $0x1c0] sm:$0xff] %vm86_vm0, %v464_v10  ;;  %1569 = vmatmul.msk.f32.gmra.mxu3 %vm86_vm0, %v464_v10 }
 0x14e   :  { %967 = vst.msk [vmem:[%s2668_s4 + $0x48] sm:$0xff] %vm957_vm1, %v728_v11  ;;  %v371_v12 = vpop.f32.mrf.mxu0 }
 0x14f   :  { %918 = vst.msk [vmem:[%s2667_s3 + $0xc8] sm:$0xff] %vm86_vm0, %v371_v12  ;;  %1538 = vmatmul.msk.f32.gmra.mxu1 %vm86_vm0, %v371_v12 }
 0x150   :  { %v821_v13 = vpop.f32.mrf.mxu3 }
 0x151   :  { %998 = vst.msk [vmem:[%s2668_s4 + $0x140] sm:$0xff] %vm957_vm1, %v821_v13  ;;  %1166 = vrot.lane.b32.xlu1 %v821_v13, %s1613_s0  ;;  %1104 = vrot.lane.b32.xlu0 %v728_v11, %s1613_s0 }
 0x154   :  { %v467_v14 = vpop.f32.mrf.mxu2  ;;  %v731_v15 = vpop.f32.mrf.mxu1 }
 0x155   :  { %950 = vst.msk [vmem:[%s2667_s3 + $0x1c8] sm:$0xff] %vm86_vm0, %v467_v14  ;;  %1570 = vmatmul.msk.f32.gmra.mxu3 %vm86_vm0, %v467_v14 }
 0x156   :  { %968 = vst.msk [vmem:[%s2668_s4 + $0x50] sm:$0xff] %vm957_vm1, %v731_v15  ;;  %v374_v16 = vpop.f32.mrf.mxu0 }
 0x157   :  { %919 = vst.msk [vmem:[%s2667_s3 + $0xd0] sm:$0xff] %vm86_vm0, %v374_v16  ;;  %1539 = vmatmul.msk.f32.gmra.mxu1 %vm86_vm0, %v374_v16 }
 0x158   :  { %v824_v17 = vpop.f32.mrf.mxu3 }
 0x159   :  { %999 = vst.msk [vmem:[%s2668_s4 + $0x148] sm:$0xff] %vm957_vm1, %v824_v17  ;;  %1168 = vrot.lane.b32.xlu2 %v824_v17, %s1613_s0  ;;  %1106 = vrot.lane.b32.xlu1 %v731_v15, %s1613_s0 }
 0x15c   :  { %v470_v18 = vpop.f32.mrf.mxu2  ;;  %v734_v19 = vpop.f32.mrf.mxu1 }
 0x15d   :  { %951 = vst.msk [vmem:[%s2667_s3 + $0x1d0] sm:$0xff] %vm86_vm0, %v470_v18  ;;  %1571 = vmatmul.msk.f32.gmra.mxu3 %vm86_vm0, %v470_v18 }
 0x15e   :  { %969 = vst.msk [vmem:[%s2668_s4 + $0x58] sm:$0xff] %vm957_vm1, %v734_v19  ;;  %v377_v20 = vpop.f32.mrf.mxu0 }
 0x15f   :  { %920 = vst.msk [vmem:[%s2667_s3 + $0xd8] sm:$0xff] %vm86_vm0, %v377_v20  ;;  %1540 = vmatmul.msk.f32.gmra.mxu1 %vm86_vm0, %v377_v20 }
 0x160   :  { %v827_v21 = vpop.f32.mrf.mxu3 }
 0x161   :  { %1000 = vst.msk [vmem:[%s2668_s4 + $0x150] sm:$0xff] %vm957_vm1, %v827_v21  ;;  %1170 = vrot.lane.b32.xlu0 %v827_v21, %s1613_s0  ;;  %1108 = vrot.lane.b32.xlu2 %v734_v19, %s1613_s0 }
 0x164   :  { %v473_v22 = vpop.f32.mrf.mxu2  ;;  %v737_v23 = vpop.f32.mrf.mxu1 }
 0x165   :  { %952 = vst.msk [vmem:[%s2667_s3 + $0x1d8] sm:$0xff] %vm86_vm0, %v473_v22  ;;  %1572 = vmatmul.msk.f32.gmra.mxu3 %vm86_vm0, %v473_v22 }
 0x166   :  { %970 = vst.msk [vmem:[%s2668_s4 + $0x60] sm:$0xff] %vm957_vm1, %v737_v23  ;;  %v380_v24 = vpop.f32.mrf.mxu0 }
 0x167   :  { %921 = vst.msk [vmem:[%s2667_s3 + $0xe0] sm:$0xff] %vm86_vm0, %v380_v24  ;;  %1541 = vmatmul.msk.f32.gmra.mxu1 %vm86_vm0, %v380_v24 }
 0x168   :  { %v830_v25 = vpop.f32.mrf.mxu3 }
 0x169   :  { %1001 = vst.msk [vmem:[%s2668_s4 + $0x158] sm:$0xff] %vm957_vm1, %v830_v25  ;;  %1172 = vrot.lane.b32.xlu1 %v830_v25, %s1613_s0  ;;  %1110 = vrot.lane.b32.xlu0 %v737_v23, %s1613_s0 }
 0x16b   :  { %v2492_v58 = vpop.permute.xlu2 %1150 }
 0x16c   :  { %v476_v26 = vpop.f32.mrf.mxu2  ;;  %v740_v27 = vpop.f32.mrf.mxu1 }
 0x16d   :  { %953 = vst.msk [vmem:[%s2667_s3 + $0x1e0] sm:$0xff] %vm86_vm0, %v476_v26  ;;  %1573 = vmatmul.msk.f32.gmra.mxu3 %vm86_vm0, %v476_v26 }
 0x16e   :  { %971 = vst.msk [vmem:[%s2668_s4 + $0x68] sm:$0xff] %vm957_vm1, %v740_v27  ;;  %v383_v28 = vpop.f32.mrf.mxu0 }
 0x16f   :  { %922 = vst.msk [vmem:[%s2667_s3 + $0xe8] sm:$0xff] %vm86_vm0, %v383_v28  ;;  %1542 = vmatmul.msk.f32.gmra.mxu1 %vm86_vm0, %v383_v28 }
 0x170   :  { %v833_v29 = vpop.f32.mrf.mxu3 }
 0x171   :  { %1002 = vst.msk [vmem:[%s2668_s4 + $0x160] sm:$0xff] %vm957_vm1, %v833_v29  ;;  %1174 = vrot.lane.b32.xlu2 %v833_v29, %s1613_s0  ;;  %1112 = vrot.lane.b32.xlu1 %v740_v27, %s1613_s0 }
 0x174   :  { %v479_v30 = vpop.f32.mrf.mxu2  ;;  %v743_v31 = vpop.f32.mrf.mxu1 }
 0x175   :  { %954 = vst.msk [vmem:[%s2667_s3 + $0x1e8] sm:$0xff] %vm86_vm0, %v479_v30  ;;  %1574 = vmatmul.msk.f32.gmra.mxu3 %vm86_vm0, %v479_v30 }
 0x176   :  { %972 = vst.msk [vmem:[%s2668_s4 + $0x70] sm:$0xff] %vm957_vm1, %v743_v31  ;;  %v386_v32 = vpop.f32.mrf.mxu0 }
 0x177   :  { %923 = vst.msk [vmem:[%s2667_s3 + $0xf0] sm:$0xff] %vm86_vm0, %v386_v32  ;;  %1543 = vmatmul.msk.f32.gmra.mxu1 %vm86_vm0, %v386_v32  ;;  %v2490_v57 = vpop.permute.xlu0 %1086 }
 0x178   :  { %v836_v33 = vpop.f32.mrf.mxu3 }
 0x179   :  { %1003 = vst.msk [vmem:[%s2668_s4 + $0x168] sm:$0xff] %vm957_vm1, %v836_v33  ;;  %1176 = vrot.lane.b32.xlu0 %v836_v33, %s1613_s0  ;;  %1114 = vrot.lane.b32.xlu2 %v743_v31, %s1613_s0 }
 0x17c   :  { %v482_v34 = vpop.f32.mrf.mxu2  ;;  %v746_v35 = vpop.f32.mrf.mxu1 }
 0x17d   :  { %955 = vst.msk [vmem:[%s2667_s3 + $0x1f0] sm:$0xff] %vm86_vm0, %v482_v34  ;;  %1575 = vmatmul.msk.f32.gmra.mxu3 %vm86_vm0, %v482_v34 }
 0x17e   :  { %973 = vst.msk [vmem:[%s2668_s4 + $0x78] sm:$0xff] %vm957_vm1, %v746_v35  ;;  %v389_v36 = vpop.f32.mrf.mxu0 }
 0x17f   :  { %924 = vst.msk [vmem:[%s2667_s3 + $0xf8] sm:$0xff] %vm86_vm0, %v389_v36  ;;  %1544 = vmatmul.msk.f32.gmra.mxu1 %vm86_vm0, %v389_v36  ;;  %v2508_v63 = vpop.permute.xlu0 %1088 }
 0x180   :  { %v839_v37 = vpop.f32.mrf.mxu3  ;;  %v2506_v62 = vpop.permute.xlu2 %1094 }
 0x181   :  { %1004 = vst.msk [vmem:[%s2668_s4 + $0x170] sm:$0xff] %vm957_vm1, %v839_v37  ;;  %1178 = vrot.lane.b32.xlu1 %v839_v37, %s1613_s0  ;;  %1116 = vrot.lane.b32.xlu0 %v746_v35, %s1613_s0 }
 0x184   :  { %v485_v38 = vpop.f32.mrf.mxu2  ;;  %v749_v39 = vpop.f32.mrf.mxu1 }
 0x185   :  { %956 = vst.msk [vmem:[%s2667_s3 + $0x1f8] sm:$0xff] %vm86_vm0, %v485_v38  ;;  %1576 = vmatmul.msk.f32.gmra.mxu3 %vm86_vm0, %v485_v38 }
 0x186   :  { %974 = vst.msk [vmem:[%s2668_s4 + $0x80] sm:$0xff] %vm957_vm1, %v749_v39 }
 0x187   :  { %v2494_v59 = vpop.permute.xlu1 %1090 }
 0x188   :  { %v842_v40 = vpop.f32.mrf.mxu3  ;;  %v2522_v4 = vpop.permute.xlu2 %1156 }
 0x189   :  { %1005 = vst.msk [vmem:[%s2668_s4 + $0x178] sm:$0xff] %vm957_vm1, %v842_v40  ;;  %1180 = vrot.lane.b32.xlu2 %v842_v40, %s1613_s0  ;;  %1118 = vrot.lane.b32.xlu1 %v749_v39, %s1613_s0 }
 0x18b   :  { %v1153_v5 = vpop.permute.xlu0 %1152 }
 0x18c   :  { %v752_v41 = vpop.f32.mrf.mxu1 }
 0x18d   :  { %975 = vst.msk [vmem:[%s2668_s4 + $0x88] sm:$0xff] %vm957_vm1, %v752_v41 }
 0x18f   :  { %v2514_v1 = vpop.permute.xlu1 %1092 }
 0x190   :  { %v845_v42 = vpop.f32.mrf.mxu3  ;;  %v2536_v9 = vpop.permute.xlu2 %1096 }
 0x191   :  { %1006 = vst.msk [vmem:[%s2668_s4 + $0x180] sm:$0xff] %vm957_vm1, %v845_v42  ;;  %1182 = vrot.lane.b32.xlu0 %v845_v42, %s1613_s0  ;;  %1120 = vrot.lane.b32.xlu2 %v752_v41, %s1613_s0 }
 0x194   :  { %v755_v43 = vpop.f32.mrf.mxu1 }
 0x195   :  { %976 = vst.msk [vmem:[%s2668_s4 + $0x90] sm:$0xff] %vm957_vm1, %v755_v43 }
 0x197   :  { %v2528_v6 = vpop.permute.xlu1 %1154 }
 0x198   :  { %v848_v44 = vpop.f32.mrf.mxu3 }
 0x199   :  { %1007 = vst.msk [vmem:[%s2668_s4 + $0x188] sm:$0xff] %vm957_vm1, %v848_v44  ;;  %1184 = vrot.lane.b32.xlu1 %v848_v44, %s1613_s0  ;;  %1122 = vrot.lane.b32.xlu0 %v755_v43, %s1613_s0 }
 0x19b   :  { %v2558_v15 = vpop.permute.xlu2 %1162 }
 0x19c   :  { %v758_v45 = vpop.f32.mrf.mxu1 }
 0x19d   :  { %977 = vst.msk [vmem:[%s2668_s4 + $0x98] sm:$0xff] %vm957_vm1, %v758_v45 }
 0x1a0   :  { %v851_v46 = vpop.f32.mrf.mxu3 }
 0x1a1   :  { %1008 = vst.msk [vmem:[%s2668_s4 + $0x190] sm:$0xff] %vm957_vm1, %v851_v46  ;;  %1186 = vrot.lane.b32.xlu2 %v851_v46, %s1613_s0  ;;  %1124 = vrot.lane.b32.xlu1 %v758_v45, %s1613_s0 }
 0x1a3   :  { %v2542_v10 = vpop.permute.xlu0 %1158  ;;  %v2572_v19 = vpop.permute.xlu2 %1102 }
 0x1a4   :  { %v761_v47 = vpop.f32.mrf.mxu1 }
 0x1a5   :  { %978 = vst.msk [vmem:[%s2668_s4 + $0xa0] sm:$0xff] %vm957_vm1, %v761_v47 }
 0x1a8   :  { %v854_v48 = vpop.f32.mrf.mxu3 }
 0x1a9   :  { %1009 = vst.msk [vmem:[%s2668_s4 + $0x198] sm:$0xff] %vm957_vm1, %v854_v48  ;;  %1188 = vrot.lane.b32.xlu0 %v854_v48, %s1613_s0  ;;  %1126 = vrot.lane.b32.xlu2 %v761_v47, %s1613_s0 }
 0x1ab   :  { %v2544_v11 = vpop.permute.xlu1 %1160  ;;  %v2556_v14 = vpop.permute.xlu0 %1098 }
 0x1ac   :  { %v764_v49 = vpop.f32.mrf.mxu1 }
 0x1ad   :  { %979 = vst.msk [vmem:[%s2668_s4 + $0xa8] sm:$0xff] %vm957_vm1, %v764_v49 }
 0x1b0   :  { %v857_v50 = vpop.f32.mrf.mxu3 }
 0x1b1   :  { %1010 = vst.msk [vmem:[%s2668_s4 + $0x1a0] sm:$0xff] %vm957_vm1, %v857_v50  ;;  %1190 = vrot.lane.b32.xlu1 %v857_v50, %s1613_s0  ;;  %1128 = vrot.lane.b32.xlu0 %v764_v49, %s1613_s0 }
 0x1b3   :  { %v2560_v16 = vpop.permute.xlu1 %1100  ;;  %v1169_v26 = vpop.permute.xlu2 %1168 }
 0x1b4   :  { %v767_v51 = vpop.f32.mrf.mxu1 }
 0x1b5   :  { %980 = vst.msk [vmem:[%s2668_s4 + $0xb0] sm:$0xff] %vm957_vm1, %v767_v51 }
 0x1b8   :  { %v860_v52 = vpop.f32.mrf.mxu3 }
 0x1b9   :  { %1011 = vst.msk [vmem:[%s2668_s4 + $0x1a8] sm:$0xff] %vm957_vm1, %v860_v52  ;;  %1192 = vrot.lane.b32.xlu2 %v860_v52, %s1613_s0  ;;  %1130 = vrot.lane.b32.xlu1 %v767_v51, %s1613_s0 }
 0x1bb   :  { %v2574_v20 = vpop.permute.xlu0 %1164  ;;  %v2603_v29 = vpop.permute.xlu2 %1108 }
 0x1bc   :  { %v770_v53 = vpop.f32.mrf.mxu1 }
 0x1bd   :  { %981 = vst.msk [vmem:[%s2668_s4 + $0xb8] sm:$0xff] %vm957_vm1, %v770_v53 }
 0x1c0   :  { %v863_v54 = vpop.f32.mrf.mxu3 }
 0x1c1   :  { %1012 = vst.msk [vmem:[%s2668_s4 + $0x1b0] sm:$0xff] %vm957_vm1, %v863_v54  ;;  %1194 = vrot.lane.b32.xlu0 %v863_v54, %s1613_s0  ;;  %1132 = vrot.lane.b32.xlu2 %v770_v53, %s1613_s0 }
 0x1c3   :  { %v2582_v22 = vpop.permute.xlu1 %1166  ;;  %v2588_v24 = vpop.permute.xlu0 %1104 }
 0x1c4   :  { %v773_v55 = vpop.f32.mrf.mxu1 }
 0x1c5   :  { %982 = vst.msk [vmem:[%s2668_s4 + $0xc0] sm:$0xff] %vm957_vm1, %v773_v55 }
 0x1c8   :  { %v866_v56 = vpop.f32.mrf.mxu3 }
 0x1c9   :  { %1013 = vst.msk [vmem:[%s2668_s4 + $0x1b8] sm:$0xff] %vm957_vm1, %v866_v56  ;;  %1196 = vrot.lane.b32.xlu1 %v866_v56, %s1613_s0  ;;  %1134 = vrot.lane.b32.xlu0 %v773_v55, %s1613_s0 }
 0x1cb   :  { %v2596_v27 = vpop.permute.xlu1 %1106  ;;  %v2609_v33 = vpop.permute.xlu2 %1174 }
 0x1cc   :  { %v776_v60 = vpop.f32.mrf.mxu1 }
 0x1cd   :  { %983 = vst.msk [vmem:[%s2668_s4 + $0xc8] sm:$0xff] %vm957_vm1, %v776_v60 }
 0x1d0   :  { %v869_v61 = vpop.f32.mrf.mxu3 }
 0x1d1   :  { %1014 = vst.msk [vmem:[%s2668_s4 + $0x1c0] sm:$0xff] %vm957_vm1, %v869_v61  ;;  %1198 = vrot.lane.b32.xlu2 %v869_v61, %s1613_s0  ;;  %1136 = vrot.lane.b32.xlu1 %v776_v60, %s1613_s0 }
 0x1d3   :  { %v1171_v30 = vpop.permute.xlu0 %1170  ;;  %v2613_v35 = vpop.permute.xlu2 %1114 }
 0x1d4   :  { %v779_v0 = vpop.f32.mrf.mxu1 }
 0x1d5   :  { %984 = vst.msk [vmem:[%s2668_s4 + $0xd0] sm:$0xff] %vm957_vm1, %v779_v0 }
 0x1d8   :  { %v872_v2 = vpop.f32.mrf.mxu3 }
 0x1d9   :  { %1015 = vst.msk [vmem:[%s2668_s4 + $0x1c8] sm:$0xff] %vm957_vm1, %v872_v2  ;;  %1200 = vrot.lane.b32.xlu0 %v872_v2, %s1613_s0  ;;  %1138 = vrot.lane.b32.xlu2 %v779_v0, %s1613_s0 }
 0x1db   :  { %v2605_v31 = vpop.permute.xlu1 %1172  ;;  %v2607_v32 = vpop.permute.xlu0 %1110 }
 0x1dc   :  { %v782_v3 = vpop.f32.mrf.mxu1 }
 0x1dd   :  { %985 = vst.msk [vmem:[%s2668_s4 + $0xd8] sm:$0xff] %vm957_vm1, %v782_v3 }
 0x1e0   :  { %v875_v7 = vpop.f32.mrf.mxu3 }
 0x1e1   :  { %1016 = vst.msk [vmem:[%s2668_s4 + $0x1d0] sm:$0xff] %vm957_vm1, %v875_v7  ;;  %1202 = vrot.lane.b32.xlu1 %v875_v7, %s1613_s0  ;;  %1140 = vrot.lane.b32.xlu0 %v782_v3, %s1613_s0 }
 0x1e3   :  { %v2611_v34 = vpop.permute.xlu1 %1112  ;;  %v2621_v39 = vpop.permute.xlu2 %1180 }
 0x1e4   :  { %v785_v8 = vpop.f32.mrf.mxu1 }
 0x1e5   :  { %986 = vst.msk [vmem:[%s2668_s4 + $0xe0] sm:$0xff] %vm957_vm1, %v785_v8 }
 0x1e8   :  { %v878_v12 = vpop.f32.mrf.mxu3 }
 0x1e9   :  { %1017 = vst.msk [vmem:[%s2668_s4 + $0x1d8] sm:$0xff] %vm957_vm1, %v878_v12  ;;  %1204 = vrot.lane.b32.xlu2 %v878_v12, %s1613_s0  ;;  %1142 = vrot.lane.b32.xlu1 %v785_v8, %s1613_s0 }
 0x1eb   :  { %v2615_v36 = vpop.permute.xlu0 %1176  ;;  %v1121_v41 = vpop.permute.xlu2 %1120 }
 0x1ec   :  { %v788_v13 = vpop.f32.mrf.mxu1 }
 0x1ed   :  { %987 = vst.msk [vmem:[%s2668_s4 + $0xe8] sm:$0xff] %vm957_vm1, %v788_v13 }
 0x1f0   :  { %v881_v17 = vpop.f32.mrf.mxu3 }
 0x1f1   :  { %1018 = vst.msk [vmem:[%s2668_s4 + $0x1e0] sm:$0xff] %vm957_vm1, %v881_v17  ;;  %1206 = vrot.lane.b32.xlu0 %v881_v17, %s1613_s0  ;;  %1144 = vrot.lane.b32.xlu2 %v788_v13, %s1613_s0 }
 0x1f3   :  { %v2617_v37 = vpop.permute.xlu1 %1178  ;;  %v2619_v38 = vpop.permute.xlu0 %1116 }
 0x1f4   :  { %v791_v18 = vpop.f32.mrf.mxu1 }
 0x1f5   :  { %988 = vst.msk [vmem:[%s2668_s4 + $0xf0] sm:$0xff] %vm957_vm1, %v791_v18 }
 0x1f8   :  { %v884_v21 = vpop.f32.mrf.mxu3 }
 0x1f9   :  { %1019 = vst.msk [vmem:[%s2668_s4 + $0x1e8] sm:$0xff] %vm957_vm1, %v884_v21  ;;  %1208 = vrot.lane.b32.xlu1 %v884_v21, %s1613_s0  ;;  %1146 = vrot.lane.b32.xlu0 %v791_v18, %s1613_s0 }
 0x1fb   :  { %v1119_v40 = vpop.permute.xlu1 %1118  ;;  %v2630_v45 = vpop.permute.xlu2 %1186 }
 0x1fc   :  { %v794_v23 = vpop.f32.mrf.mxu1 }
 0x1fd   :  { %989 = vst.msk [vmem:[%s2668_s4 + $0xf8] sm:$0xff] %vm957_vm1, %v794_v23 }
 0x200   :  { %v887_v25 = vpop.f32.mrf.mxu3 }
 0x201   :  { %1020 = vst.msk [vmem:[%s2668_s4 + $0x1f0] sm:$0xff] %vm957_vm1, %v887_v25  ;;  %1210 = vrot.lane.b32.xlu2 %v887_v25, %s1613_s0  ;;  %1148 = vrot.lane.b32.xlu1 %v794_v23, %s1613_s0 }
 0x203   :  { %v2624_v42 = vpop.permute.xlu0 %1182  ;;  %v1127_v47 = vpop.permute.xlu2 %1126 }
 0x208   :  { %v890_v28 = vpop.f32.mrf.mxu3 }
 0x209   :  { %1021 = vst.msk [vmem:[%s2668_s4 + $0x1f8] sm:$0xff] %vm957_vm1, %v890_v28  ;;  %1212 = vrot.lane.b32.xlu0 %v890_v28, %s1613_s0  ;;  %s1614_s4 = smov [#allocation2]  }
 0x20a   :  { %s1434_s0 = sshll.u32 %s1614_s4, 4  ;;  %s1435_s0 = int_to_ptr.vmem [resolvable:$true] %s1434_s0 }
 0x20b   :  { %v2626_v43 = vpop.permute.xlu1 %1184  ;;  %v1123_v44 = vpop.permute.xlu0 %1122 }
 0x213   :  { %v1125_v46 = vpop.permute.xlu1 %1124  ;;  %v1193_v51 = vpop.permute.xlu2 %1192 }
 0x21b   :  { %v1189_v48 = vpop.permute.xlu0 %1188  ;;  %v1133_v53 = vpop.permute.xlu2 %1132 }
 0x223   :  { %v1191_v49 = vpop.permute.xlu1 %1190  ;;  %v1129_v50 = vpop.permute.xlu0 %1128 }
 0x227   :  { %1310 = vxpose.xlu2.b32.start [1/16] (narrow) %v1119_v40, 8 }
 0x22b   :  { %1342 = vxpose.xlu0.b32.start [1/16] (narrow) %v2492_v58, 8  ;;  %v1131_v52 = vpop.permute.xlu1 %1130 }
 0x22f   :  { %1311 = vxpose.xlu2.b32.cont [2/16] (narrow) %v1121_v41, 8 }
 0x233   :  { %1343 = vxpose.xlu0.b32.cont [2/16] (narrow) %v1153_v5, 8  ;;  %v1195_v54 = vpop.permute.xlu0 %1194 }
 0x236   :  { %1278 = vxpose.xlu1.b32.start [1/16] (narrow) %v2490_v57, 8  ;;  %v1199_v57 = vpop.permute.xlu2 %1198 }
 0x237   :  { %1312 = vxpose.xlu2.b32.cont [3/16] (narrow) %v1123_v44, 8 }
 0x23b   :  { %1344 = vxpose.xlu0.b32.cont [3/16] (narrow) %v2528_v6, 8  ;;  %v1197_v55 = vpop.permute.xlu1 %1196  ;;  %v1135_v56 = vpop.permute.xlu0 %1134 }
 0x23e   :  { %1279 = vxpose.xlu1.b32.cont [2/16] (narrow) %v2508_v63, 8 }
 0x23f   :  { %1313 = vxpose.xlu2.b32.cont [4/16] (narrow) %v1125_v46, 8 }
 0x243   :  { %1345 = vxpose.xlu0.b32.cont [4/16] (narrow) %v2522_v4, 8  ;;  %v1137_v58 = vpop.permute.xlu1 %1136 }
 0x246   :  { %1280 = vxpose.xlu1.b32.cont [3/16] (narrow) %v2494_v59, 8  ;;  %v1139_v59 = vpop.permute.xlu2 %1138 }
 0x247   :  { %1314 = vxpose.xlu2.b32.cont [5/16] (narrow) %v1127_v47, 8 }
 0x24b   :  { %1346 = vxpose.xlu0.b32.cont [5/16] (narrow) %v2542_v10, 8  ;;  %v1201_v60 = vpop.permute.xlu0 %1200  ;;  %v1420_v10 = vlaneseq }
 0x24d   :  { %vm1422_vm5 = vcmp.lt.s32.totalorder %v1420_v10, 512 }
 0x24e   :  { %1281 = vxpose.xlu1.b32.cont [4/16] (narrow) %v2514_v1, 8  ;;  %v1205_v63 = vpop.permute.xlu2 %1204 }
 0x24f   :  { %1315 = vxpose.xlu2.b32.cont [6/16] (narrow) %v1129_v50, 8 }
 0x253   :  { %1347 = vxpose.xlu0.b32.cont [6/16] (narrow) %v2544_v11, 8  ;;  %v1203_v61 = vpop.permute.xlu1 %1202 }
 0x256   :  { %1282 = vxpose.xlu1.b32.cont [5/16] (narrow) %v2506_v62, 8  ;;  %v1141_v62 = vpop.permute.xlu0 %1140  ;;  %v1145_v2 = vpop.permute.xlu2 %1144 }
 0x257   :  { %1316 = vxpose.xlu2.b32.cont [7/16] (narrow) %v1131_v52, 8 }
 0x25b   :  { %1348 = vxpose.xlu0.b32.cont [7/16] (narrow) %v2558_v15, 8  ;;  %v1143_v0 = vpop.permute.xlu1 %1142 }
 0x25e   :  { %1283 = vxpose.xlu1.b32.cont [6/16] (narrow) %v2536_v9, 8  ;;  %v1211_v6 = vpop.permute.xlu2 %1210 }
 0x25f   :  { %1317 = vxpose.xlu2.b32.cont [8/16] (narrow) %v1133_v53, 8 }
 0x263   :  { %1349 = vxpose.xlu0.b32.cont [8/16] (narrow) %v2574_v20, 8  ;;  %v1207_v1 = vpop.permute.xlu0 %1206 }
 0x266   :  { %1284 = vxpose.xlu1.b32.cont [7/16] (narrow) %v2556_v14, 8 }
 0x267   :  { %1318 = vxpose.xlu2.b32.cont [9/16] (narrow) %v1135_v56, 8 }
 0x26b   :  { %1350 = vxpose.xlu0.b32.cont [9/16] (narrow) %v2582_v22, 8  ;;  %v1209_v3 = vpop.permute.xlu1 %1208  ;;  %v1147_v4 = vpop.permute.xlu0 %1146 }
 0x26e   :  { %1285 = vxpose.xlu1.b32.cont [8/16] (narrow) %v2560_v16, 8 }
 0x26f   :  { %1319 = vxpose.xlu2.b32.cont [10/16] (narrow) %v1137_v58, 8 }
 0x273   :  { %1351 = vxpose.xlu0.b32.cont [10/16] (narrow) %v1169_v26, 8  ;;  %v1149_v5 = vpop.permute.xlu1 %1148 }
 0x276   :  { %1286 = vxpose.xlu1.b32.cont [9/16] (narrow) %v2572_v19, 8 }
 0x277   :  { %1320 = vxpose.xlu2.b32.cont [11/16] (narrow) %v1139_v59, 8 }
 0x27b   :  { %1352 = vxpose.xlu0.b32.cont [11/16] (narrow) %v1171_v30, 8  ;;  %v1213_v7 = vpop.permute.xlu0 %1212 }
 0x27e   :  { %1287 = vxpose.xlu1.b32.cont [10/16] (narrow) %v2588_v24, 8 }
 0x27f   :  { %1321 = vxpose.xlu2.b32.cont [12/16] (narrow) %v1141_v62, 8 }
 0x283   :  { %1353 = vxpose.xlu0.b32.cont [12/16] (narrow) %v2605_v31, 8 }
 0x286   :  { %1288 = vxpose.xlu1.b32.cont [11/16] (narrow) %v2596_v27, 8 }
 0x287   :  { %1322 = vxpose.xlu2.b32.cont [13/16] (narrow) %v1143_v0, 8 }
 0x28b   :  { %1354 = vxpose.xlu0.b32.cont [13/16] (narrow) %v2609_v33, 8 }
 0x28e   :  { %1289 = vxpose.xlu1.b32.cont [12/16] (narrow) %v2603_v29, 8 }
 0x28f   :  { %1323 = vxpose.xlu2.b32.cont [14/16] (narrow) %v1145_v2, 8 }
 0x293   :  { %1355 = vxpose.xlu0.b32.cont [14/16] (narrow) %v2615_v36, 8 }
 0x296   :  { %1290 = vxpose.xlu1.b32.cont [13/16] (narrow) %v2607_v32, 8 }
 0x297   :  { %1324 = vxpose.xlu2.b32.cont [15/16] (narrow) %v1147_v4, 8 }
 0x29b   :  { %1356 = vxpose.xlu0.b32.cont [15/16] (narrow) %v2617_v37, 8 }
 0x29e   :  { %1291 = vxpose.xlu1.b32.cont [14/16] (narrow) %v2611_v34, 8 }
 0x29f   :  { %1325 = vxpose.xlu2.b32.end [16/16] (narrow) %v1149_v5, 8 }
 0x2a3   :  { %1357 = vxpose.xlu0.b32.end [16/16] (narrow) %v2621_v39, 8 }
 0x2a6   :  { %1292 = vxpose.xlu1.b32.cont [15/16] (narrow) %v2613_v35, 8 }
 0x2a7   :  { %1374 = vxpose.xlu2.b32.start [1/16] (narrow) %v2624_v42, 8 }
 0x2ae   :  { %1293 = vxpose.xlu1.b32.end [16/16] (narrow) %v2619_v38, 8 }
 0x2af   :  { %1375 = vxpose.xlu2.b32.cont [2/16] (narrow) %v2626_v43, 8 }
 0x2b7   :  { %1376 = vxpose.xlu2.b32.cont [3/16] (narrow) %v2630_v45, 8 }
 0x2bf   :  { %1377 = vxpose.xlu2.b32.cont [4/16] (narrow) %v1189_v48, 8 }
 0x2c0   :  { %v1326_v8 = vpop.trf.xlu2 }
 0x2c1   :  { %v1410_v11 = vrot.slane %v1326_v8, 7 }
 0x2c7   :  { %1378 = vxpose.xlu2.b32.cont [5/16] (narrow) %v1191_v49, 8 }
 0x2cf   :  { %1379 = vxpose.xlu2.b32.cont [6/16] (narrow) %v1193_v51, 8  ;;  %v1358_v9 = vpop.trf.xlu0 }
 0x2d0   :  { %v1411_v12 = vrot.slane %v1358_v9, 6 }
 0x2d7   :  { %1380 = vxpose.xlu2.b32.cont [7/16] (narrow) %v1195_v54, 8 }
 0x2da   :  { %v1294_v13 = vpop.trf.xlu1 }
 0x2db   :  { %v1414_v16 = vsel %vm1413_vm2, %v1294_v13, %v1410_v11 }
 0x2df   :  { %1381 = vxpose.xlu2.b32.cont [8/16] (narrow) %v1197_v55, 8 }
 0x2e7   :  { %1382 = vxpose.xlu2.b32.cont [9/16] (narrow) %v1199_v57, 8 }
 0x2ef   :  { %1383 = vxpose.xlu2.b32.cont [10/16] (narrow) %v1201_v60, 8 }
 0x2f7   :  { %1384 = vxpose.xlu2.b32.cont [11/16] (narrow) %v1203_v61, 8 }
 0x2ff   :  { %1385 = vxpose.xlu2.b32.cont [12/16] (narrow) %v1205_v63, 8 }
 0x307   :  { %1386 = vxpose.xlu2.b32.cont [13/16] (narrow) %v1207_v1, 8 }
 0x30f   :  { %1387 = vxpose.xlu2.b32.cont [14/16] (narrow) %v1209_v3, 8 }
 0x317   :  { %1388 = vxpose.xlu2.b32.cont [15/16] (narrow) %v1211_v6, 8 }
 0x31f   :  { %1389 = vxpose.xlu2.b32.end [16/16] (narrow) %v1213_v7, 8 }
 0x340   :  { %v1390_v14 = vpop.trf.xlu2 }
 0x341   :  { %v1412_v15 = vrot.slane %v1390_v14, 5 }
 0x343   :  { %v1416_v17 = vsel %vm1415_vm3, %v1411_v12, %v1412_v15 }
 0x344   :  { %v1418_v18 = vsel %vm1417_vm4, %v1414_v16, %v1416_v17 }
 0x345   :  { %1424 = vst.msk [vmem:[#allocation2] sm:$0xf] %vm1422_vm5, %v1418_v18 }
 0x346   :  { %1439 = dma.vmem_to_hbm [thread:$0]  %s1435_s0, 64, %s1437_s14, [#allocation3]  }
 0x347   :  { %1611 = dma.done.wait [#allocation3], 64  }
 0x348   :  { %1612 = vsyncadd [#allocation3], 4294967232 }
 0x349   :  { %1448 = vsyncpa [#allocation3], 1 }

</bundles_post_ra>
